<compile_context>
chip_gen: v7x
topology: tpu7x:2x2x1
jax: 0.10.0
libtpu: 0.0.40
codegen_flags: <defaults>
</compile_context>

<pallas_src>
import jax
import jax.numpy as jnp
from jax.experimental import pallas as pl
from jax.experimental.pallas import tpu as pltpu

LANE = 128      # lane tile (last dim)
SUBLANE = 8     # sublane tile (second-to-last dim, f32)


def _round_up(x, m):
    return (x + m - 1) // m * m


# ---------------------------------------------------------------------------
# Kernel
# ---------------------------------------------------------------------------
def gru_cell_kernel(x_ref, h_ref, wx_ref, wh_ref, b_ref, out_ref):
    """One batch tile of a GRU cell.

    x_ref  : (Bt, in_dim)    f32 input tile
    h_ref  : (Bt, H)         f32 hidden-state tile (read once; residual path)
    wx_ref : (in_dim, 4*Hp)  packed x-weights, columns = [r | z | n_x | 0  ]
    wh_ref : (H, 4*Hp)       packed h-weights, columns = [r | z | 0   | n_h]
    b_ref  : (1, 4*Hp)       f32 packed biases (r/z biases pre-summed)
    out_ref: (Bt, H)         f32 new hidden state
    """
    hp = b_ref.shape[-1] // 4          # padded per-gate width (multiple of 128)
    h_true = h_ref.shape[-1]           # true hidden width H
    mm_dtype = wh_ref.dtype            # bf16 (perf) or f32 (exactness check)

    h = h_ref[...]                     # f32, single HBM read of the hidden state

    # Two accumulating MXU pushes over the packed [r | z | n_x | n_h] columns.
    # Operands are cast to the weight dtype in-register; accumulation is f32.
    proj = jnp.dot(h.astype(mm_dtype), wh_ref[...],
                   preferred_element_type=jnp.float32)
    proj = proj + jnp.dot(x_ref[...].astype(mm_dtype), wx_ref[...],
                          preferred_element_type=jnp.float32)
    proj = proj + b_ref[...]

    # Gate math in f32 (portable to v5e).  sigmoid(x) == 0.5*tanh(0.5*x)+0.5:
    # one EUP pass covers r and z together on the lane-aligned [0 : 2*Hp) slab.
    rz = 0.5 * jnp.tanh(0.5 * proj[:, :2 * hp]) + 0.5
    r = rz[:, :hp]
    z = rz[:, hp:2 * hp]
    n = jnp.tanh(proj[:, 2 * hp:3 * hp] + r * proj[:, 3 * hp:4 * hp])

    # h_t = (1 - z) * n + z * h  ==  n + z * (h - n)   (3 VPU ops)
    n = n[:, :h_true]
    z = z[:, :h_true]
    out_ref[...] = (n + z * (h - n)).astype(out_ref.dtype)


# ---------------------------------------------------------------------------
# Parameter packing (call ONCE, outside any per-timestep loop)
# ---------------------------------------------------------------------------
def pack_gru_params(w_x, b_x, w_h, b_h, *, matmul_dtype=jnp.bfloat16):
    """Pack PyTorch-layout GRUCell params into two weight blocks + one bias row.

    w_x: (3H, in_dim), w_h: (3H, H) with gate row order [r | z | n] (nn.Linear).
    Returns:
      wx_packed: (in_dim, 4*Hp)   columns [r | z | n_x | 0 ]
      wh_packed: (H, 4*Hp)        columns [r | z | 0   | n_h]
      b_packed : (1, 4*Hp) f32    [b_r(x+h) | b_z(x+h) | b_nx | b_nh]
    """
    three_h, in_dim = w_x.shape
    H = three_h // 3
    Hp = _round_up(H, LANE)

    wxr, wxz, wxn = w_x[:H], w_x[H:2 * H], w_x[2 * H:]
    whr, whz, whn = w_h[:H], w_h[H:2 * H], w_h[2 * H:]
    bxr, bxz, bxn = b_x[:H], b_x[H:2 * H], b_x[2 * H:]
    bhr, bhz, bhn = b_h[:H], b_h[H:2 * H], b_h[2 * H:]

    wx_p = jnp.zeros((in_dim, 4 * Hp), jnp.float32)
    wx_p = wx_p.at[:, 0 * Hp:0 * Hp + H].set(wxr.T)
    wx_p = wx_p.at[:, 1 * Hp:1 * Hp + H].set(wxz.T)
    wx_p = wx_p.at[:, 2 * Hp:2 * Hp + H].set(wxn.T)

    wh_p = jnp.zeros((H, 4 * Hp), jnp.float32)
    wh_p = wh_p.at[:, 0 * Hp:0 * Hp + H].set(whr.T)
    wh_p = wh_p.at[:, 1 * Hp:1 * Hp + H].set(whz.T)
    wh_p = wh_p.at[:, 3 * Hp:3 * Hp + H].set(whn.T)

    b = jnp.zeros((1, 4 * Hp), jnp.float32)
    b = b.at[0, 0 * Hp:0 * Hp + H].set(bxr + bhr)   # r bias pre-summed
    b = b.at[0, 1 * Hp:1 * Hp + H].set(bxz + bhz)   # z bias pre-summed
    b = b.at[0, 2 * Hp:2 * Hp + H].set(bxn)         # n_x bias
    b = b.at[0, 3 * Hp:3 * Hp + H].set(bhn)         # n_h bias (inside r*(.))

    return wx_p.astype(matmul_dtype), wh_p.astype(matmul_dtype), b


# ---------------------------------------------------------------------------
# Wrapper
# ---------------------------------------------------------------------------
def gru_cell(x, hidden_state, wx_packed, wh_packed, b_packed, *, block_b=512):
    """Single GRU step.  x: (B, in_dim); hidden_state: (B, H) -> (B, H) f32."""
    B, in_dim = x.shape
    H = hidden_state.shape[-1]
    Hp = b_packed.shape[-1] // 4
    assert wx_packed.shape == (in_dim, 4 * Hp), "packed x-weight shape mismatch"
    assert wh_packed.shape == (H, 4 * Hp), "packed h-weight shape mismatch"
    mm_dtype = wh_packed.dtype

    # --- batch tiling --------------------------------------------------------
    #  * multiple of 16 rows (bf16 packing of the in-kernel operand casts),
    #  * >= 2 grid steps whenever the batch allows it (v7x megacore),
    #  * sized to minimise ragged-tile waste (Pallas masks the partial tile).
    n_tiles = pl.cdiv(B, block_b)
    if B > 16 and n_tiles < 2:
        n_tiles = 2
    tile_b = _round_up(pl.cdiv(B, n_tiles), 16)
    tile_b = min(tile_b, _round_up(B, SUBLANE))
    grid = (pl.cdiv(B, tile_b),)

    # --- VMEM budget (generation-aware) --------------------------------------
    try:
        vmem_cap = pltpu.get_tpu_info().vmem_capacity_bytes
    except Exception:
        vmem_cap = 64 << 20            # conservative (v7x per-TC)
    w_itm = jnp.dtype(mm_dtype).itemsize

    def _vmem_need(weight_bufs):
        return (weight_bufs * (in_dim + H + 1) * 4 * Hp * w_itm   # weights + bias
                + 2 * tile_b * (in_dim + H) * 4                   # x/h tiles (dbl buf)
                + 2 * tile_b * H * 4                              # out tiles (dbl buf)
                + 2 * tile_b * 4 * Hp * 4)                        # proj slab + temps

    def _build(single_buffer_weights):
        if single_buffer_weights:
            # Constant index_map -> one VMEM buffer suffices; halves the
            # resident-weight footprint (matters on v7x's 64 MiB VMEM).
            w_kwargs = {"pipeline_mode": pl.Buffered(1)}
            weight_bufs = 1
        else:
            w_kwargs = {}
            weight_bufs = 2
        vmem_limit = int(min(max(32 << 20, int(1.5 * _vmem_need(weight_bufs))),
                             int(0.8 * vmem_cap)))
        return pl.pallas_call(
            gru_cell_kernel,
            out_shape=jax.ShapeDtypeStruct((B, H), jnp.float32),
            grid_spec=pltpu.PrefetchScalarGridSpec(
                num_scalar_prefetch=0,
                grid=grid,
                in_specs=[
                    pl.BlockSpec((tile_b, in_dim), lambda i: (i, 0)),          # x tile
                    pl.BlockSpec((tile_b, H), lambda i: (i, 0)),               # h tile
                    pl.BlockSpec((in_dim, 4 * Hp), lambda i: (0, 0), **w_kwargs),
                    pl.BlockSpec((H, 4 * Hp), lambda i: (0, 0), **w_kwargs),
                    pl.BlockSpec((1, 4 * Hp), lambda i: (0, 0), **w_kwargs),
                ],
                out_specs=pl.BlockSpec((tile_b, H), lambda i: (i, 0)),
            ),
            compiler_params=pltpu.CompilerParams(
                dimension_semantics=("parallel",),   # megacore / 2 TCs on v7x
                vmem_limit_bytes=vmem_limit,
            ),
        )

    try:
        return _build(True)(x, hidden_state, wx_packed, wh_packed, b_packed)
    except Exception:
        # Fallback if this JAX build rejects single-buffered BlockSpecs.
        return _build(False)(x, hidden_state, wx_packed, wh_packed, b_packed)


# ---------------------------------------------------------------------------
# Reference + init (mirrors the PyTorch module)
# ---------------------------------------------------------------------------
def xavier_uniform(key, shape, dtype=jnp.float32):
    fan_out, fan_in = shape  # nn.Linear weight is (out_features, in_features)
    a = (6.0 / (fan_in + fan_out)) ** 0.5
    return jax.random.uniform(key, shape, dtype, minval=-a, maxval=a)


def reference_gru_cell(x, h, w_x, b_x, w_h, b_h):
    H = h.shape[-1]
    xp = x @ w_x.T + b_x
    hp = h @ w_h.T + b_h
    r = jax.nn.sigmoid(xp[:, :H] + hp[:, :H])
    z = jax.nn.sigmoid(xp[:, H:2 * H] + hp[:, H:2 * H])
    n = jnp.tanh(xp[:, 2 * H:] + r * hp[:, 2 * H:])
    return (1.0 - z) * n + z * h


if __name__ == "__main__":
    B, IN_DIM, HID = 8, 16, 32

    key = jax.random.PRNGKey(0)
    k_x, k_h, k_wx, k_wh = jax.random.split(key, 4)

    # reset_parameters(): Xavier uniform for 2-D weights, zeros for biases.
    w_x = xavier_uniform(k_wx, (3 * HID, IN_DIM))
    b_x = jnp.zeros((3 * HID,), jnp.float32)
    w_h = xavier_uniform(k_wh, (3 * HID, HID))
    b_h = jnp.zeros((3 * HID,), jnp.float32)

    x = jax.random.normal(k_x, (B, IN_DIM), jnp.float32)
    h0 = jax.random.normal(k_h, (B, HID), jnp.float32)

    ref = reference_gru_cell(x, h0, w_x, b_x, w_h, b_h)

    # 1) f32 matmul path: semantics check against the PyTorch formula.
    wx32, wh32, b32 = pack_gru_params(w_x, b_x, w_h, b_h, matmul_dtype=jnp.float32)
    h_f32 = gru_cell(x, h0, wx32, wh32, b32)
    jax.block_until_ready(h_f32)
    assert h_f32.shape == (B, HID)
    assert jnp.allclose(h_f32, ref, atol=5e-3, rtol=5e-3), "f32 mismatch vs reference"

    # 2) bf16 matmul path (perf config: bf16 MXU operands, f32 accumulation and
    #    f32 gate math). Tolerance reflects bf16 operand rounding only.
    wxbf, whbf, bbf = pack_gru_params(w_x, b_x, w_h, b_h, matmul_dtype=jnp.bfloat16)
    h_bf = gru_cell(x, h0, wxbf, whbf, bbf)
    jax.block_until_ready(h_bf)
    assert jnp.allclose(h_bf, ref, atol=5e-2, rtol=5e-2), "bf16 mismatch vs reference"

    print("KERNEL_OK")
</pallas_src>

<mosaic_0001>
module attributes {stable_mosaic.version = 11 : i64} {
  func.func @gru_cell_kernel(%arg0: i32, %arg1: memref<8x16xf32, #tpu.memory_space<vmem>>, %arg2: memref<8x32xf32, #tpu.memory_space<vmem>>, %arg3: memref<16x512xf32, #tpu.memory_space<vmem>>, %arg4: memref<32x512xf32, #tpu.memory_space<vmem>>, %arg5: memref<1x512xf32, #tpu.memory_space<vmem>>, %arg6: memref<8x32xf32, #tpu.memory_space<vmem>>) attributes {dimension_semantics = [#tpu.dimension_semantics<parallel>], iteration_bounds = array<i64: 1>, scalar_prefetch = 0 : i64, scratch_operands = 0 : i64, tpu.core_type = #tpu.core_type<tc>, window_params = [{transform_indices = @transform_0, window_bounds = array<i64: 8, 16>}, {transform_indices = @transform_1, window_bounds = array<i64: 8, 32>}, {pipeline_mode = #tpu.pipeline_mode<synchronous>, transform_indices = @transform_2, window_bounds = array<i64: 16, 512>}, {pipeline_mode = #tpu.pipeline_mode<synchronous>, transform_indices = @transform_3, window_bounds = array<i64: 32, 512>}, {pipeline_mode = #tpu.pipeline_mode<synchronous>, transform_indices = @transform_4, window_bounds = array<i64: 1, 512>}, {transform_indices = @transform_5, window_bounds = array<i64: 8, 32>}]} {
    %c0 = arith.constant 0 : index
    %c0_0 = arith.constant 0 : index
    %0 = vector.load %arg2[%c0, %c0_0] : memref<8x32xf32, #tpu.memory_space<vmem>>, vector<8x32xf32>
    %c0_1 = arith.constant 0 : index
    %c0_2 = arith.constant 0 : index
    %1 = vector.load %arg4[%c0_1, %c0_2] : memref<32x512xf32, #tpu.memory_space<vmem>>, vector<32x512xf32>
    %cst = arith.constant dense<0.000000e+00> : vector<8x512xf32>
    %2 = tpu.matmul %0, %1, %cst {dimension_numbers = #tpu.dot_dimension_numbers<[1], [0], [0], [1], [0, 0, 1, 1], [], []>} : vector<8x32xf32>, vector<32x512xf32>, vector<8x512xf32> -> vector<8x512xf32>
    %c0_3 = arith.constant 0 : index
    %c0_4 = arith.constant 0 : index
    %3 = vector.load %arg1[%c0_3, %c0_4] : memref<8x16xf32, #tpu.memory_space<vmem>>, vector<8x16xf32>
    %c0_5 = arith.constant 0 : index
    %c0_6 = arith.constant 0 : index
    %4 = vector.load %arg3[%c0_5, %c0_6] : memref<16x512xf32, #tpu.memory_space<vmem>>, vector<16x512xf32>
    %cst_7 = arith.constant dense<0.000000e+00> : vector<8x512xf32>
    %5 = tpu.matmul %3, %4, %cst_7 {dimension_numbers = #tpu.dot_dimension_numbers<[1], [0], [0], [1], [0, 0, 1, 1], [], []>} : vector<8x16xf32>, vector<16x512xf32>, vector<8x512xf32> -> vector<8x512xf32>
    %6 = arith.addf %2, %5 : vector<8x512xf32>
    %c0_8 = arith.constant 0 : index
    %c0_9 = arith.constant 0 : index
    %7 = vector.load %arg5[%c0_8, %c0_9] : memref<1x512xf32, #tpu.memory_space<vmem>>, vector<1x512xf32>
    %8 = vector.broadcast %7 : vector<1x512xf32> to vector<8x512xf32>
    %9 = arith.addf %6, %8 : vector<8x512xf32>
    %10 = vector.extract_strided_slice %9 {offsets = [0, 0], sizes = [8, 256], strides = [1, 1]} : vector<8x512xf32> to vector<8x256xf32>
    %cst_10 = arith.constant 5.000000e-01 : f32
    %11 = vector.broadcast %cst_10 : f32 to vector<8x256xf32>
    %12 = arith.mulf %11, %10 : vector<8x256xf32>
    %13 = math.tanh %12 : vector<8x256xf32>
    %cst_11 = arith.constant 5.000000e-01 : f32
    %14 = vector.broadcast %cst_11 : f32 to vector<8x256xf32>
    %15 = arith.mulf %14, %13 : vector<8x256xf32>
    %cst_12 = arith.constant 5.000000e-01 : f32
    %16 = vector.broadcast %cst_12 : f32 to vector<8x256xf32>
    %17 = arith.addf %15, %16 : vector<8x256xf32>
    %18 = vector.extract_strided_slice %17 {offsets = [0, 0], sizes = [8, 128], strides = [1, 1]} : vector<8x256xf32> to vector<8x128xf32>
    %19 = vector.extract_strided_slice %17 {offsets = [0, 128], sizes = [8, 128], strides = [1, 1]} : vector<8x256xf32> to vector<8x128xf32>
    %20 = vector.extract_strided_slice %9 {offsets = [0, 256], sizes = [8, 128], strides = [1, 1]} : vector<8x512xf32> to vector<8x128xf32>
    %21 = vector.extract_strided_slice %9 {offsets = [0, 384], sizes = [8, 128], strides = [1, 1]} : vector<8x512xf32> to vector<8x128xf32>
    %22 = arith.mulf %18, %21 : vector<8x128xf32>
    %23 = arith.addf %20, %22 : vector<8x128xf32>
    %24 = math.tanh %23 : vector<8x128xf32>
    %25 = vector.extract_strided_slice %24 {offsets = [0, 0], sizes = [8, 32], strides = [1, 1]} : vector<8x128xf32> to vector<8x32xf32>
    %26 = vector.extract_strided_slice %19 {offsets = [0, 0], sizes = [8, 32], strides = [1, 1]} : vector<8x128xf32> to vector<8x32xf32>
    %27 = arith.subf %0, %25 : vector<8x32xf32>
    %28 = arith.mulf %26, %27 : vector<8x32xf32>
    %29 = arith.addf %25, %28 : vector<8x32xf32>
    %c0_13 = arith.constant 0 : index
    %c0_14 = arith.constant 0 : index
    %30 = vector.load %arg6[%c0_13, %c0_14] : memref<8x32xf32, #tpu.memory_space<vmem>>, vector<8x32xf32>
    tpu.vector_store %arg6[%c0_13, %c0_14], %29 {strides = array<i32>} : memref<8x32xf32, #tpu.memory_space<vmem>>, vector<8x32xf32>,
    return
  }
  func.func @transform_0(%arg0: i32) -> (i32, i32) {
    %c0_i32 = arith.constant 0 : i32
    %c0_i32_0 = arith.constant 0 : i32
    return %arg0, %c0_i32 : i32, i32
  }
  func.func @transform_1(%arg0: i32) -> (i32, i32) {
    %c0_i32 = arith.constant 0 : i32
    %c0_i32_0 = arith.constant 0 : i32
    return %arg0, %c0_i32 : i32, i32
  }
  func.func @transform_2(%arg0: i32) -> (i32, i32) {
    %c0_i32 = arith.constant 0 : i32
    %c0_i32_0 = arith.constant 0 : i32
    %c0_i32_1 = arith.constant 0 : i32
    return %c0_i32, %c0_i32_0 : i32, i32
  }
  func.func @transform_3(%arg0: i32) -> (i32, i32) {
    %c0_i32 = arith.constant 0 : i32
    %c0_i32_0 = arith.constant 0 : i32
    %c0_i32_1 = arith.constant 0 : i32
    return %c0_i32, %c0_i32_0 : i32, i32
  }
  func.func @transform_4(%arg0: i32) -> (i32, i32) {
    %c0_i32 = arith.constant 0 : i32
    %c0_i32_0 = arith.constant 0 : i32
    %c0_i32_1 = arith.constant 0 : i32
    return %c0_i32, %c0_i32_0 : i32, i32
  }
  func.func @transform_5(%arg0: i32) -> (i32, i32) {
    %c0_i32 = arith.constant 0 : i32
    %c0_i32_0 = arith.constant 0 : i32
    return %arg0, %c0_i32 : i32, i32
  }
}

module attributes {stable_mosaic.version = 11 : i64} {
  func.func @gru_cell_kernel(%arg0: i32, %arg1: memref<8x16xf32, #tpu.memory_space<vmem>>, %arg2: memref<8x32xf32, #tpu.memory_space<vmem>>, %arg3: memref<16x512xf32, #tpu.memory_space<vmem>>, %arg4: memref<32x512xf32, #tpu.memory_space<vmem>>, %arg5: memref<1x512xf32, #tpu.memory_space<vmem>>, %arg6: memref<8x32xf32, #tpu.memory_space<vmem>>) attributes {dimension_semantics = [#tpu.dimension_semantics<parallel>], iteration_bounds = array<i64: 1>, scalar_prefetch = 0 : i64, scratch_operands = 0 : i64, tpu.core_type = #tpu.core_type<tc>, window_params = [{transform_indices = @transform_0, window_bounds = array<i64: 8, 16>}, {transform_indices = @transform_1, window_bounds = array<i64: 8, 32>}, {pipeline_mode = #tpu.pipeline_mode<synchronous>, transform_indices = @transform_2, window_bounds = array<i64: 16, 512>}, {pipeline_mode = #tpu.pipeline_mode<synchronous>, transform_indices = @transform_3, window_bounds = array<i64: 32, 512>}, {pipeline_mode = #tpu.pipeline_mode<synchronous>, transform_indices = @transform_4, window_bounds = array<i64: 1, 512>}, {transform_indices = @transform_5, window_bounds = array<i64: 8, 32>}]} {
    %c0 = arith.constant 0 : index
    %c0_0 = arith.constant 0 : index
    %0 = vector.load %arg2[%c0, %c0_0] : memref<8x32xf32, #tpu.memory_space<vmem>>, vector<8x32xf32>
    %c0_1 = arith.constant 0 : index
    %c0_2 = arith.constant 0 : index
    %1 = vector.load %arg4[%c0_1, %c0_2] : memref<32x512xf32, #tpu.memory_space<vmem>>, vector<32x512xf32>
    %cst = arith.constant dense<0.000000e+00> : vector<8x512xf32>
    %2 = tpu.matmul %0, %1, %cst {dimension_numbers = #tpu.dot_dimension_numbers<[1], [0], [0], [1], [0, 0, 1, 1], [], []>} : vector<8x32xf32>, vector<32x512xf32>, vector<8x512xf32> -> vector<8x512xf32>
    %c0_3 = arith.constant 0 : index
    %c0_4 = arith.constant 0 : index
    %3 = vector.load %arg1[%c0_3, %c0_4] : memref<8x16xf32, #tpu.memory_space<vmem>>, vector<8x16xf32>
    %c0_5 = arith.constant 0 : index
    %c0_6 = arith.constant 0 : index
    %4 = vector.load %arg3[%c0_5, %c0_6] : memref<16x512xf32, #tpu.memory_space<vmem>>, vector<16x512xf32>
    %cst_7 = arith.constant dense<0.000000e+00> : vector<8x512xf32>
    %5 = tpu.matmul %3, %4, %cst_7 {dimension_numbers = #tpu.dot_dimension_numbers<[1], [0], [0], [1], [0, 0, 1, 1], [], []>} : vector<8x16xf32>, vector<16x512xf32>, vector<8x512xf32> -> vector<8x512xf32>
    %6 = arith.addf %2, %5 : vector<8x512xf32>
    %c0_8 = arith.constant 0 : index
    %c0_9 = arith.constant 0 : index
    %7 = vector.load %arg5[%c0_8, %c0_9] : memref<1x512xf32, #tpu.memory_space<vmem>>, vector<1x512xf32>
    %8 = vector.broadcast %7 : vector<1x512xf32> to vector<8x512xf32>
    %9 = arith.addf %6, %8 : vector<8x512xf32>
    %10 = vector.extract_strided_slice %9 {offsets = [0, 0], sizes = [8, 256], strides = [1, 1]} : vector<8x512xf32> to vector<8x256xf32>
    %cst_10 = arith.constant 5.000000e-01 : f32
    %11 = vector.broadcast %cst_10 : f32 to vector<8x256xf32>
    %12 = arith.mulf %11, %10 : vector<8x256xf32>
    %13 = math.tanh %12 : vector<8x256xf32>
    %cst_11 = arith.constant 5.000000e-01 : f32
    %14 = vector.broadcast %cst_11 : f32 to vector<8x256xf32>
    %15 = arith.mulf %14, %13 : vector<8x256xf32>
    %cst_12 = arith.constant 5.000000e-01 : f32
    %16 = vector.broadcast %cst_12 : f32 to vector<8x256xf32>
    %17 = arith.addf %15, %16 : vector<8x256xf32>
    %18 = vector.extract_strided_slice %17 {offsets = [0, 0], sizes = [8, 128], strides = [1, 1]} : vector<8x256xf32> to vector<8x128xf32>
    %19 = vector.extract_strided_slice %17 {offsets = [0, 128], sizes = [8, 128], strides = [1, 1]} : vector<8x256xf32> to vector<8x128xf32>
    %20 = vector.extract_strided_slice %9 {offsets = [0, 256], sizes = [8, 128], strides = [1, 1]} : vector<8x512xf32> to vector<8x128xf32>
    %21 = vector.extract_strided_slice %9 {offsets = [0, 384], sizes = [8, 128], strides = [1, 1]} : vector<8x512xf32> to vector<8x128xf32>
    %22 = arith.mulf %18, %21 : vector<8x128xf32>
    %23 = arith.addf %20, %22 : vector<8x128xf32>
    %24 = math.tanh %23 : vector<8x128xf32>
    %25 = vector.extract_strided_slice %24 {offsets = [0, 0], sizes = [8, 32], strides = [1, 1]} : vector<8x128xf32> to vector<8x32xf32>
    %26 = vector.extract_strided_slice %19 {offsets = [0, 0], sizes = [8, 32], strides = [1, 1]} : vector<8x128xf32> to vector<8x32xf32>
    %27 = arith.subf %0, %25 : vector<8x32xf32>
    %28 = arith.mulf %26, %27 : vector<8x32xf32>
    %29 = arith.addf %25, %28 : vector<8x32xf32>
    %c0_13 = arith.constant 0 : index
    %c0_14 = arith.constant 0 : index
    %30 = vector.load %arg6[%c0_13, %c0_14] : memref<8x32xf32, #tpu.memory_space<vmem>>, vector<8x32xf32>
    tpu.vector_store %arg6[%c0_13, %c0_14], %29 {strides = array<i32>} : memref<8x32xf32, #tpu.memory_space<vmem>>, vector<8x32xf32>,
    return
  }
  func.func @transform_0(%arg0: i32) -> (i32, i32) {
    %c0_i32 = arith.constant 0 : i32
    %c0_i32_0 = arith.constant 0 : i32
    return %arg0, %c0_i32 : i32, i32
  }
  func.func @transform_1(%arg0: i32) -> (i32, i32) {
    %c0_i32 = arith.constant 0 : i32
    %c0_i32_0 = arith.constant 0 : i32
    return %arg0, %c0_i32 : i32, i32
  }
  func.func @transform_2(%arg0: i32) -> (i32, i32) {
    %c0_i32 = arith.constant 0 : i32
    %c0_i32_0 = arith.constant 0 : i32
    %c0_i32_1 = arith.constant 0 : i32
    return %c0_i32, %c0_i32_0 : i32, i32
  }
  func.func @transform_3(%arg0: i32) -> (i32, i32) {
    %c0_i32 = arith.constant 0 : i32
    %c0_i32_0 = arith.constant 0 : i32
    %c0_i32_1 = arith.constant 0 : i32
    return %c0_i32, %c0_i32_0 : i32, i32
  }
  func.func @transform_4(%arg0: i32) -> (i32, i32) {
    %c0_i32 = arith.constant 0 : i32
    %c0_i32_0 = arith.constant 0 : i32
    %c0_i32_1 = arith.constant 0 : i32
    return %c0_i32, %c0_i32_0 : i32, i32
  }
  func.func @transform_5(%arg0: i32) -> (i32, i32) {
    %c0_i32 = arith.constant 0 : i32
    %c0_i32_0 = arith.constant 0 : i32
    return %arg0, %c0_i32 : i32, i32
  }
}

</mosaic_0001>

<bundles_post_ra>
// kernel: tpu_custom_call.1
= control target key start
LH: loop header
LB: loop body
LE: loop exit
PB: predicated region body
PF: predicated region fallthrough
CT: control target
= control target key end

     0   :  { %10 = vsyncpa [#allocation3], 0  ;;  %s718_s0 = inlined_call_operand.hbm [shape: f32[8,16], index: 0, kind: input, shape index: {}]   ;;  %s719_s1 = inlined_call_operand.hbm [shape: f32[8,32], index: 1, kind: input, shape index: {}]   ;;  %s720_s2 = inlined_call_operand.hbm [shape: f32[16,512], index: 2, kind: input, shape index: {}]   ;;  %s721_s3 = inlined_call_operand.hbm [shape: f32[32,512], index: 3, kind: input, shape index: {}]   ;;  %s722_s4 = inlined_call_operand.vmem [shape: f32[1,512], index: 4, kind: input, shape index: {}]   ;;  %s723_s5 = inlined_call_operand.hbm [shape: f32[8,32], index: 5, kind: output, shape index: {}]  }
   0x1   :  { %11 = vsyncpa [#allocation6], 0 }
   0x2   :  { %12 = vsyncpa [#allocation9], 0 }
   0x3   :  { %13 = vsyncpa [#allocation4], 0  ;;  %s612_s18 = smov [#allocation5]   ;;  %s613_s20 = smov [#allocation2]  }
   0x4   :  { %s30_s19 = sshll.u32 %s612_s18, 4  ;;  %s20_s21 = sshll.u32 %s613_s20, 4  ;;  %s31_s19 = int_to_ptr.vmem [resolvable:$true] %s30_s19  ;;  %s21_s21 = int_to_ptr.vmem [resolvable:$true] %s20_s21 }
   0x5   :  { %s494_s24 = scalar_lea.hbm %s719_s1, 128 }
   0x6   :  { %p495_p0 = scmp.ne.s32.totalorder %s719_s1, %s494_s24  ;;  %p498_p1 = scmp.lt.u32.totalorder %s494_s24, %s719_s1 }
   0x8   :  { %p500_p2 = pnand %p498_p1, %p495_p0 }
   0xa   :  { %503 = shalt.err (!%p500_p2)
}
   0xb   :  { %s504_s29 = scalar_lea.vmem %s31_s19, 128  ;;  %p509_p4 = scmp.lt.s32.totalorder %s31_s19, %s31_s19 }
   0xc   :  { %p505_p3 = scmp.ne.s32.totalorder %s31_s19, %s504_s29  ;;  %p510_p5 = scmp.lt.s32.totalorder %s504_s29, %s504_s29 }
   0xe   :  { %p511_p6 = por %p510_p5, %p509_p4 }
  0x10   :  { %p512_p7 = pnand %p511_p6, %p505_p3 }
  0x12   :  { %515 = shalt.err (!%p512_p7)
}
  0x13   :  { %33 = dma.hbm_to_vmem [thread:$0]  %s719_s1, 128, %s31_s19, [#allocation6]  }
  0x14   :  { %s516_s9 = scalar_lea.hbm %s718_s0, 128 }
  0x15   :  { %p517_p8 = scmp.ne.s32.totalorder %s718_s0, %s516_s9  ;;  %p520_p9 = scmp.lt.u32.totalorder %s516_s9, %s718_s0 }
  0x17   :  { %p522_p10 = pnand %p520_p9, %p517_p8 }
  0x19   :  { %525 = shalt.err (!%p522_p10)
}
  0x1a   :  { %s526_s14 = scalar_lea.vmem %s21_s21, 128  ;;  %p531_p12 = scmp.lt.s32.totalorder %s21_s21, %s21_s21 }
  0x1b   :  { %p527_p11 = scmp.ne.s32.totalorder %s21_s21, %s526_s14  ;;  %p532_p13 = scmp.lt.s32.totalorder %s526_s14, %s526_s14 }
  0x1d   :  { %p533_p0 = por %p532_p13, %p531_p12 }
  0x1f   :  { %p534_p1 = pnand %p533_p0, %p527_p11 }
  0x21   :  { %537 = shalt.err (!%p534_p1)
}
  0x22   :  { %23 = dma.hbm_to_vmem [thread:$0]  %s718_s0, 128, %s21_s21, [#allocation3]  }
  0x23   :  { %s614_s16 = smov [#allocation7]   ;;  %s538_s20 = scalar_lea.hbm %s720_s2, 1024 }
  0x24   :  { %s39_s17 = sshll.u32 %s614_s16, 4  ;;  %p539_p2 = scmp.ne.s32.totalorder %s720_s2, %s538_s20  ;;  %s40_s17 = int_to_ptr.vmem [resolvable:$true] %s39_s17 }
  0x25   :  { %p542_p3 = scmp.lt.u32.totalorder %s538_s20, %s720_s2 }
  0x27   :  { %p544_p4 = pnand %p542_p3, %p539_p2 }
  0x29   :  { %547 = shalt.err (!%p544_p4)
}
  0x2a   :  { %s548_s26 = scalar_lea.vmem %s40_s17, 1024  ;;  %p553_p6 = scmp.lt.s32.totalorder %s40_s17, %s40_s17 }
  0x2b   :  { %p549_p5 = scmp.ne.s32.totalorder %s40_s17, %s548_s26  ;;  %p554_p7 = scmp.lt.s32.totalorder %s548_s26, %s548_s26 }
  0x2d   :  { %p555_p8 = por %p554_p7, %p553_p6 }
  0x2f   :  { %p556_p9 = pnand %p555_p8, %p549_p5 }
  0x31   :  { %559 = shalt.err (!%p556_p9)
}
  0x32   :  { %s615_s0 = smov 512   ;;  %s616_s21 = smov 32  }
  0x33   :  { %45 = dma.hbm_to_vmem [thread:$0]  %s720_s2, 1024, %s40_s17, [#allocation6], %s615_s0, %s615_s0, %s616_s21  }
  0x34   :  { %s617_s29 = smov [#allocation8]   ;;  %s560_s8 = scalar_lea.hbm %s721_s3, 2048 }
  0x35   :  { %s51_s30 = sshll.u32 %s617_s29, 4  ;;  %p561_p10 = scmp.ne.s32.totalorder %s721_s3, %s560_s8  ;;  %s52_s30 = int_to_ptr.vmem [resolvable:$true] %s51_s30 }
  0x36   :  { %p564_p11 = scmp.lt.u32.totalorder %s560_s8, %s721_s3 }
  0x38   :  { %p566_p12 = pnand %p564_p11, %p561_p10 }
  0x3a   :  { %569 = shalt.err (!%p566_p12)
}
  0x3b   :  { %s570_s13 = scalar_lea.vmem %s52_s30, 2048  ;;  %p575_p0 = scmp.lt.s32.totalorder %s52_s30, %s52_s30 }
  0x3c   :  { %p571_p13 = scmp.ne.s32.totalorder %s52_s30, %s570_s13  ;;  %p576_p1 = scmp.lt.s32.totalorder %s570_s13, %s570_s13 }
  0x3e   :  { %p577_p2 = por %p576_p1, %p575_p0 }
  0x40   :  { %p578_p3 = pnand %p577_p2, %p571_p13 }
  0x42   :  { %581 = shalt.err (!%p578_p3)
}
  0x43   :  { %57 = dma.hbm_to_vmem [thread:$0]  %s721_s3, 2048, %s52_s30, [#allocation9], %s615_s0, %s615_s0, %s616_s21  }
  0x44   :  { %604 = dma.done.wait [#allocation3], 128  }
  0x45   :  { %605 = vsyncadd [#allocation3], 4294967168 }
  0x46   :  { %606 = dma.done.wait [#allocation6], 1152  }
  0x47   :  { %607 = vsyncadd [#allocation6], 4294966144 }
  0x48   :  { %608 = dma.done.wait [#allocation9], 2048  }
  0x49   :  { %609 = vsyncadd [#allocation9], 4294965248  ;;  %v618_v0 = vmov 0.0   ;;  %v91_v1 = vld [vmem:[#allocation7 + $0x8] sm:$0xff]  ;;  %v90_v3 = vld [vmem:[#allocation7] sm:$0xff]  ;;  %vm98_vm0 = vcmask 130048   ;;  %v392_v39 = vlaneseq }
  0x4a   :  { %166 = vmatprep.mubr.f32.mxu0 %v618_v0  ;;  %237 = vmatprep.mubr.f32.mxu1 %v618_v0  ;;  %v95_v2 = vld [vmem:[#allocation7 + $0x28] sm:$0xff]  ;;  %v94_v5 = vld [vmem:[#allocation7 + $0x20] sm:$0xff]  ;;  %v89_v8 = vld [vmem:[#allocation2] sm:$0xff]  ;;  %vm244_vm1 = vcmask 261120  }
  0x4b   :  { %v452_v4 = vpack.c.bf16 %v95_v2, %v91_v1  ;;  %v74_v6 = vld [vmem:[#allocation8 + $0x8] sm:$0xff]  ;;  %v454_v7 = vpack.c.bf16 %v94_v5, %v90_v3  ;;  %v73_v10 = vld [vmem:[#allocation8] sm:$0xff]  ;;  %v93_v13 = vld [vmem:[#allocation7 + $0x18] sm:$0xff]  ;;  %v393_v40 = vshrl.u32 %v392_v39, 7 }
  0x4c   :  { %v78_v9 = vld [vmem:[#allocation8 + $0x28] sm:$0xff]  ;;  %v77_v11 = vld [vmem:[#allocation8 + $0x20] sm:$0xff]  ;;  %v97_v14 = vld [vmem:[#allocation7 + $0x38] sm:$0xff] }
  0x4d   :  { %453 = vmatprep.subr.bf16.mxu0 %v452_v4  ;;  %v460_v12 = vpack.c.bf16 %v78_v9, %v74_v6  ;;  %v82_v15 = vld [vmem:[#allocation8 + $0x48] sm:$0xff]  ;;  %v462_v16 = vpack.c.bf16 %v77_v11, %v73_v10  ;;  %v456_v17 = vpack.c.bf16 %v97_v14, %v93_v13  ;;  %v92_v19 = vld [vmem:[#allocation7 + $0x10] sm:$0xff]  ;;  %v81_v23 = vld [vmem:[#allocation8 + $0x40] sm:$0xff]  ;;  %v394_v41 = vsub.s32 0, %v393_v40 }
  0x4e   :  { %455 = vmatpush1.bf16.msra.mxu0 %v454_v7  ;;  %v86_v18 = vld [vmem:[#allocation8 + $0x68] sm:$0xff]  ;;  %v96_v20 = vld [vmem:[#allocation7 + $0x30] sm:$0xff]  ;;  %v85_v24 = vld [vmem:[#allocation8 + $0x60] sm:$0xff]  ;;  %v398_v47 = vsub.s32 1, %v393_v40  ;;  %v406_v53 = vsub.s32 3, %v393_v40  ;;  %v402_v54 = vsub.s32 2, %v393_v40 }
  0x4f   :  { %461 = vmatprep.subr.bf16.mxu0 %v460_v12  ;;  %v464_v21 = vpack.c.bf16 %v86_v18, %v82_v15  ;;  %v458_v22 = vpack.c.bf16 %v96_v20, %v92_v19  ;;  %457 = vmatprep.subr.bf16.mxu1 %v456_v17  ;;  %v76_v25 = vld [vmem:[#allocation8 + $0x18] sm:$0xff]  ;;  %v75_v27 = vld [vmem:[#allocation8 + $0x10] sm:$0xff]  ;;  %v466_v32 = vpack.c.bf16 %v85_v24, %v81_v23 }
  0x50   :  { %v80_v26 = vld [vmem:[#allocation8 + $0x38] sm:$0xff]  ;;  %v79_v29 = vld [vmem:[#allocation8 + $0x30] sm:$0xff] }
  0x51   :  { %448 = vmatmul.mubr.msk.f32.vlgmr.msra.gmra.mrb[0].mxu0 %vm98_vm0, %v89_v8  ;;  %459 = vmatpush1.bf16.msra.mxu1 %v458_v22  ;;  %v468_v28 = vpack.c.bf16 %v80_v26, %v76_v25  ;;  %v84_v30 = vld [vmem:[#allocation8 + $0x58] sm:$0xff]  ;;  %v470_v33 = vpack.c.bf16 %v79_v29, %v75_v27  ;;  %v83_v35 = vld [vmem:[#allocation8 + $0x50] sm:$0xff] }
  0x52   :  { %v88_v31 = vld [vmem:[#allocation8 + $0x78] sm:$0xff]  ;;  %463 = vmatpush1.bf16.msra.mxu0 %v462_v16  ;;  %312 = vmatprep.mubr.f32.mxu0 %v618_v0  ;;  %v87_v36 = vld [vmem:[#allocation8 + $0x70] sm:$0xff] }
  0x53   :  { %v472_v34 = vpack.c.bf16 %v88_v31, %v84_v30  ;;  %465 = vmatprep.subr.bf16.mxu0 %v464_v21  ;;  %469 = vmatprep.subr.bf16.mxu1 %v468_v28  ;;  %v474_v37 = vpack.c.bf16 %v87_v36, %v83_v35  ;;  %v72_v38 = vld [vmem:[#allocation5] sm:$0xff]  ;;  %v390_v42 = vld [vmem:[%s722_s4] sm:$0xf]  ;;  %s619_s4 = smov [#allocation10]  }
  0x54   :  { %449 = vmatmul.mubr.msk.f32.vlgmr.msra.gmra.mrb[0].mxu1 %vm98_vm0, %v89_v8  ;;  %v395_v43 = vrot.slane %v390_v42, %v394_v41  ;;  %v399_v51 = vrot.slane %v390_v42, %v398_v47  ;;  %v407_v56 = vrot.slane %v390_v42, %v406_v53  ;;  %v403_v59 = vrot.slane %v390_v42, %v402_v54  ;;  %s437_s15 = sshll.u32 %s619_s4, 4  ;;  %s438_s15 = int_to_ptr.vmem [resolvable:$true] %s437_s15 }
  0x55   :  { %471 = vmatpush1.bf16.msra.mxu1 %v470_v33  ;;  %383 = vmatprep.mubr.f32.mxu1 %v618_v0  ;;  %s582_s16 = scalar_lea.vmem %s438_s15, 128  ;;  %p587_p5 = scmp.lt.s32.totalorder %s438_s15, %s438_s15 }
  0x56   :  { %467 = vmatpush1.bf16.msra.mxu0 %v466_v32  ;;  %473 = vmatprep.subr.bf16.mxu1 %v472_v34  ;;  %p583_p4 = scmp.ne.s32.totalorder %s438_s15, %s582_s16  ;;  %p588_p6 = scmp.lt.s32.totalorder %s582_s16, %s582_s16 }
  0x58   :  { %p589_p7 = por %p588_p6, %p587_p5 }
  0x59   :  { %450 = vmatmul.mubr.msk.f32.vlgmr.msra.gmra.mrb[0].mxu0 %vm244_vm1, %v72_v38  ;;  %475 = vmatpush1.bf16.msra.mxu1 %v474_v37 }
  0x5a   :  { %p590_p8 = pnand %p589_p7, %p583_p4 }
  0x5c   :  { %451 = vmatmul.mubr.msk.f32.vlgmr.msra.gmra.mrb[0].mxu1 %vm244_vm1, %v72_v38 }
 0x12c   :  { %v314_v44 = vpop.f32.mrb[0].mxu0 }
 0x12d   :  { %v412_v45 = vadd.f32 %v395_v43, %v314_v44  ;;  %v316_v46 = vpop.f32.mrb[1].mxu0 }
 0x12e   :  { %v413_v52 = vadd.f32 %v399_v51, %v316_v46 }
 0x12f   :  { %v416_v48 = vmul.f32 0.5, %v412_v45  ;;  %v385_v49 = vpop.f32.mrb[0].mxu1 }
 0x130   :  { %v387_v50 = vpop.f32.mrb[1].mxu1  ;;  %v417_v55 = vmul.f32 0.5, %v413_v52  ;;  %v414_v62 = vadd.f32 %v403_v59, %v385_v49 }
 0x131   :  { %488 = vtanh.f32 %v416_v48  ;;  %v415_v60 = vadd.f32 %v407_v56, %v387_v50 }
 0x132   :  { %490 = vtanh.f32 %v417_v55 }
 0x13b   :  { %v489_v57 = vpop.eup %488 }
 0x13c   :  { %v420_v58 = vmul.f32 0.5, %v489_v57  ;;  %v491_v1 = vpop.eup %490 }
 0x13d   :  { %v421_v2 = vmul.f32 0.5, %v491_v1 }
 0x13e   :  { %v422_v61 = vadd.f32 0.5, %v420_v58 }
 0x13f   :  { %v423_v4 = vadd.f32 0.5, %v421_v2 }
 0x140   :  { %v424_v63 = vmul.f32 %v422_v61, %v415_v60 }
 0x142   :  { %v425_v0 = vadd.f32 %v424_v63, %v414_v62 }
 0x144   :  { %492 = vtanh.f32 %v425_v0 }
 0x14e   :  { %v493_v3 = vpop.eup %492 }
 0x14f   :  { %v427_v5 = vsub.f32 %v72_v38, %v493_v3 }
 0x151   :  { %v428_v6 = vmul.f32 %v427_v5, %v423_v4 }
 0x153   :  { %v429_v7 = vadd.f32 %v493_v3, %v428_v6 }
 0x155   :  { %430 = vst.msk [vmem:[#allocation10] sm:$0xff] %vm244_vm1, %v429_v7 }
 0x156   :  { %593 = shalt.err (!%p590_p8)
}
 0x157   :  { %s594_s19 = scalar_lea.hbm %s723_s5, 128 }
 0x158   :  { %p595_p9 = scmp.ne.s32.totalorder %s723_s5, %s594_s19  ;;  %p598_p10 = scmp.lt.u32.totalorder %s594_s19, %s723_s5 }
 0x15a   :  { %p600_p11 = pnand %p598_p10, %p595_p9 }
 0x15c   :  { %603 = shalt.err (!%p600_p11)
}
 0x15d   :  { %440 = dma.vmem_to_hbm [thread:$0]  %s438_s15, 128, %s723_s5, [#allocation4]  }
 0x15e   :  { %610 = dma.done.wait [#allocation4], 128  }
 0x15f   :  { %611 = vsyncadd [#allocation4], 4294967168 }
 0x160   :  { %444 = vsyncpa [#allocation3], 1 }
 0x161   :  { %445 = vsyncpa [#allocation6], 1 }
 0x162   :  { %446 = vsyncpa [#allocation9], 1 }
 0x163   :  { %447 = vsyncpa [#allocation4], 1 }

// kernel: tpu_custom_call.1
= control target key start
LH: loop header
LB: loop body
LE: loop exit
PB: predicated region body
PF: predicated region fallthrough
CT: control target
= control target key end

     0   :  { %10 = vsyncpa [#allocation3], 0  ;;  %s718_s0 = inlined_call_operand.hbm [shape: f32[8,16], index: 0, kind: input, shape index: {}]   ;;  %s719_s1 = inlined_call_operand.hbm [shape: f32[8,32], index: 1, kind: input, shape index: {}]   ;;  %s720_s2 = inlined_call_operand.hbm [shape: f32[16,512], index: 2, kind: input, shape index: {}]   ;;  %s721_s3 = inlined_call_operand.hbm [shape: f32[32,512], index: 3, kind: input, shape index: {}]   ;;  %s722_s4 = inlined_call_operand.vmem [shape: f32[1,512], index: 4, kind: input, shape index: {}]   ;;  %s723_s5 = inlined_call_operand.hbm [shape: f32[8,32], index: 5, kind: output, shape index: {}]  }
   0x1   :  { %11 = vsyncpa [#allocation6], 0 }
   0x2   :  { %12 = vsyncpa [#allocation9], 0 }
   0x3   :  { %13 = vsyncpa [#allocation4], 0  ;;  %s612_s18 = smov [#allocation5]   ;;  %s613_s20 = smov [#allocation2]  }
   0x4   :  { %s30_s19 = sshll.u32 %s612_s18, 4  ;;  %s20_s21 = sshll.u32 %s613_s20, 4  ;;  %s31_s19 = int_to_ptr.vmem [resolvable:$true] %s30_s19  ;;  %s21_s21 = int_to_ptr.vmem [resolvable:$true] %s20_s21 }
   0x5   :  { %s494_s24 = scalar_lea.hbm %s719_s1, 128 }
   0x6   :  { %p495_p0 = scmp.ne.s32.totalorder %s719_s1, %s494_s24  ;;  %p498_p1 = scmp.lt.u32.totalorder %s494_s24, %s719_s1 }
   0x8   :  { %p500_p2 = pnand %p498_p1, %p495_p0 }
   0xa   :  { %503 = shalt.err (!%p500_p2)
}
   0xb   :  { %s504_s29 = scalar_lea.vmem %s31_s19, 128  ;;  %p509_p4 = scmp.lt.s32.totalorder %s31_s19, %s31_s19 }
   0xc   :  { %p505_p3 = scmp.ne.s32.totalorder %s31_s19, %s504_s29  ;;  %p510_p5 = scmp.lt.s32.totalorder %s504_s29, %s504_s29 }
   0xe   :  { %p511_p6 = por %p510_p5, %p509_p4 }
  0x10   :  { %p512_p7 = pnand %p511_p6, %p505_p3 }
  0x12   :  { %515 = shalt.err (!%p512_p7)
}
  0x13   :  { %33 = dma.hbm_to_vmem [thread:$0]  %s719_s1, 128, %s31_s19, [#allocation6]  }
  0x14   :  { %s516_s9 = scalar_lea.hbm %s718_s0, 128 }
  0x15   :  { %p517_p8 = scmp.ne.s32.totalorder %s718_s0, %s516_s9  ;;  %p520_p9 = scmp.lt.u32.totalorder %s516_s9, %s718_s0 }
  0x17   :  { %p522_p10 = pnand %p520_p9, %p517_p8 }
  0x19   :  { %525 = shalt.err (!%p522_p10)
}
  0x1a   :  { %s526_s14 = scalar_lea.vmem %s21_s21, 128  ;;  %p531_p12 = scmp.lt.s32.totalorder %s21_s21, %s21_s21 }
  0x1b   :  { %p527_p11 = scmp.ne.s32.totalorder %s21_s21, %s526_s14  ;;  %p532_p13 = scmp.lt.s32.totalorder %s526_s14, %s526_s14 }
  0x1d   :  { %p533_p0 = por %p532_p13, %p531_p12 }
  0x1f   :  { %p534_p1 = pnand %p533_p0, %p527_p11 }
  0x21   :  { %537 = shalt.err (!%p534_p1)
}
  0x22   :  { %23 = dma.hbm_to_vmem [thread:$0]  %s718_s0, 128, %s21_s21, [#allocation3]  }
  0x23   :  { %s614_s16 = smov [#allocation7]   ;;  %s538_s20 = scalar_lea.hbm %s720_s2, 1024 }
  0x24   :  { %s39_s17 = sshll.u32 %s614_s16, 4  ;;  %p539_p2 = scmp.ne.s32.totalorder %s720_s2, %s538_s20  ;;  %s40_s17 = int_to_ptr.vmem [resolvable:$true] %s39_s17 }
  0x25   :  { %p542_p3 = scmp.lt.u32.totalorder %s538_s20, %s720_s2 }
  0x27   :  { %p544_p4 = pnand %p542_p3, %p539_p2 }
  0x29   :  { %547 = shalt.err (!%p544_p4)
}
  0x2a   :  { %s548_s26 = scalar_lea.vmem %s40_s17, 1024  ;;  %p553_p6 = scmp.lt.s32.totalorder %s40_s17, %s40_s17 }
  0x2b   :  { %p549_p5 = scmp.ne.s32.totalorder %s40_s17, %s548_s26  ;;  %p554_p7 = scmp.lt.s32.totalorder %s548_s26, %s548_s26 }
  0x2d   :  { %p555_p8 = por %p554_p7, %p553_p6 }
  0x2f   :  { %p556_p9 = pnand %p555_p8, %p549_p5 }
  0x31   :  { %559 = shalt.err (!%p556_p9)
}
  0x32   :  { %s615_s0 = smov 512   ;;  %s616_s21 = smov 32  }
  0x33   :  { %45 = dma.hbm_to_vmem [thread:$0]  %s720_s2, 1024, %s40_s17, [#allocation6], %s615_s0, %s615_s0, %s616_s21  }
  0x34   :  { %s617_s29 = smov [#allocation8]   ;;  %s560_s8 = scalar_lea.hbm %s721_s3, 2048 }
  0x35   :  { %s51_s30 = sshll.u32 %s617_s29, 4  ;;  %p561_p10 = scmp.ne.s32.totalorder %s721_s3, %s560_s8  ;;  %s52_s30 = int_to_ptr.vmem [resolvable:$true] %s51_s30 }
  0x36   :  { %p564_p11 = scmp.lt.u32.totalorder %s560_s8, %s721_s3 }
  0x38   :  { %p566_p12 = pnand %p564_p11, %p561_p10 }
  0x3a   :  { %569 = shalt.err (!%p566_p12)
}
  0x3b   :  { %s570_s13 = scalar_lea.vmem %s52_s30, 2048  ;;  %p575_p0 = scmp.lt.s32.totalorder %s52_s30, %s52_s30 }
  0x3c   :  { %p571_p13 = scmp.ne.s32.totalorder %s52_s30, %s570_s13  ;;  %p576_p1 = scmp.lt.s32.totalorder %s570_s13, %s570_s13 }
  0x3e   :  { %p577_p2 = por %p576_p1, %p575_p0 }
  0x40   :  { %p578_p3 = pnand %p577_p2, %p571_p13 }
  0x42   :  { %581 = shalt.err (!%p578_p3)
}
  0x43   :  { %57 = dma.hbm_to_vmem [thread:$0]  %s721_s3, 2048, %s52_s30, [#allocation9], %s615_s0, %s615_s0, %s616_s21  }
  0x44   :  { %604 = dma.done.wait [#allocation3], 128  }
  0x45   :  { %605 = vsyncadd [#allocation3], 4294967168 }
  0x46   :  { %606 = dma.done.wait [#allocation6], 1152  }
  0x47   :  { %607 = vsyncadd [#allocation6], 4294966144 }
  0x48   :  { %608 = dma.done.wait [#allocation9], 2048  }
  0x49   :  { %609 = vsyncadd [#allocation9], 4294965248  ;;  %v618_v0 = vmov 0.0   ;;  %v91_v1 = vld [vmem:[#allocation7 + $0x8] sm:$0xff]  ;;  %v90_v3 = vld [vmem:[#allocation7] sm:$0xff]  ;;  %vm98_vm0 = vcmask 130048   ;;  %v392_v39 = vlaneseq }
  0x4a   :  { %166 = vmatprep.mubr.f32.mxu0 %v618_v0  ;;  %237 = vmatprep.mubr.f32.mxu1 %v618_v0  ;;  %v95_v2 = vld [vmem:[#allocation7 + $0x28] sm:$0xff]  ;;  %v94_v5 = vld [vmem:[#allocation7 + $0x20] sm:$0xff]  ;;  %v89_v8 = vld [vmem:[#allocation2] sm:$0xff]  ;;  %vm244_vm1 = vcmask 261120  }
  0x4b   :  { %v452_v4 = vpack.c.bf16 %v95_v2, %v91_v1  ;;  %v74_v6 = vld [vmem:[#allocation8 + $0x8] sm:$0xff]  ;;  %v454_v7 = vpack.c.bf16 %v94_v5, %v90_v3  ;;  %v73_v10 = vld [vmem:[#allocation8] sm:$0xff]  ;;  %v93_v13 = vld [vmem:[#allocation7 + $0x18] sm:$0xff]  ;;  %v393_v40 = vshrl.u32 %v392_v39, 7 }
  0x4c   :  { %v78_v9 = vld [vmem:[#allocation8 + $0x28] sm:$0xff]  ;;  %v77_v11 = vld [vmem:[#allocation8 + $0x20] sm:$0xff]  ;;  %v97_v14 = vld [vmem:[#allocation7 + $0x38] sm:$0xff] }
  0x4d   :  { %453 = vmatprep.subr.bf16.mxu0 %v452_v4  ;;  %v460_v12 = vpack.c.bf16 %v78_v9, %v74_v6  ;;  %v82_v15 = vld [vmem:[#allocation8 + $0x48] sm:$0xff]  ;;  %v462_v16 = vpack.c.bf16 %v77_v11, %v73_v10  ;;  %v456_v17 = vpack.c.bf16 %v97_v14, %v93_v13  ;;  %v92_v19 = vld [vmem:[#allocation7 + $0x10] sm:$0xff]  ;;  %v81_v23 = vld [vmem:[#allocation8 + $0x40] sm:$0xff]  ;;  %v394_v41 = vsub.s32 0, %v393_v40 }
  0x4e   :  { %455 = vmatpush1.bf16.msra.mxu0 %v454_v7  ;;  %v86_v18 = vld [vmem:[#allocation8 + $0x68] sm:$0xff]  ;;  %v96_v20 = vld [vmem:[#allocation7 + $0x30] sm:$0xff]  ;;  %v85_v24 = vld [vmem:[#allocation8 + $0x60] sm:$0xff]  ;;  %v398_v47 = vsub.s32 1, %v393_v40  ;;  %v406_v53 = vsub.s32 3, %v393_v40  ;;  %v402_v54 = vsub.s32 2, %v393_v40 }
  0x4f   :  { %461 = vmatprep.subr.bf16.mxu0 %v460_v12  ;;  %v464_v21 = vpack.c.bf16 %v86_v18, %v82_v15  ;;  %v458_v22 = vpack.c.bf16 %v96_v20, %v92_v19  ;;  %457 = vmatprep.subr.bf16.mxu1 %v456_v17  ;;  %v76_v25 = vld [vmem:[#allocation8 + $0x18] sm:$0xff]  ;;  %v75_v27 = vld [vmem:[#allocation8 + $0x10] sm:$0xff]  ;;  %v466_v32 = vpack.c.bf16 %v85_v24, %v81_v23 }
  0x50   :  { %v80_v26 = vld [vmem:[#allocation8 + $0x38] sm:$0xff]  ;;  %v79_v29 = vld [vmem:[#allocation8 + $0x30] sm:$0xff] }
  0x51   :  { %448 = vmatmul.mubr.msk.f32.vlgmr.msra.gmra.mrb[0].mxu0 %vm98_vm0, %v89_v8  ;;  %459 = vmatpush1.bf16.msra.mxu1 %v458_v22  ;;  %v468_v28 = vpack.c.bf16 %v80_v26, %v76_v25  ;;  %v84_v30 = vld [vmem:[#allocation8 + $0x58] sm:$0xff]  ;;  %v470_v33 = vpack.c.bf16 %v79_v29, %v75_v27  ;;  %v83_v35 = vld [vmem:[#allocation8 + $0x50] sm:$0xff] }
  0x52   :  { %v88_v31 = vld [vmem:[#allocation8 + $0x78] sm:$0xff]  ;;  %463 = vmatpush1.bf16.msra.mxu0 %v462_v16  ;;  %312 = vmatprep.mubr.f32.mxu0 %v618_v0  ;;  %v87_v36 = vld [vmem:[#allocation8 + $0x70] sm:$0xff] }
  0x53   :  { %v472_v34 = vpack.c.bf16 %v88_v31, %v84_v30  ;;  %465 = vmatprep.subr.bf16.mxu0 %v464_v21  ;;  %469 = vmatprep.subr.bf16.mxu1 %v468_v28  ;;  %v474_v37 = vpack.c.bf16 %v87_v36, %v83_v35  ;;  %v72_v38 = vld [vmem:[#allocation5] sm:$0xff]  ;;  %v390_v42 = vld [vmem:[%s722_s4] sm:$0xf]  ;;  %s619_s4 = smov [#allocation10]  }
  0x54   :  { %449 = vmatmul.mubr.msk.f32.vlgmr.msra.gmra.mrb[0].mxu1 %vm98_vm0, %v89_v8  ;;  %v395_v43 = vrot.slane %v390_v42, %v394_v41  ;;  %v399_v51 = vrot.slane %v390_v42, %v398_v47  ;;  %v407_v56 = vrot.slane %v390_v42, %v406_v53  ;;  %v403_v59 = vrot.slane %v390_v42, %v402_v54  ;;  %s437_s15 = sshll.u32 %s619_s4, 4  ;;  %s438_s15 = int_to_ptr.vmem [resolvable:$true] %s437_s15 }
  0x55   :  { %471 = vmatpush1.bf16.msra.mxu1 %v470_v33  ;;  %383 = vmatprep.mubr.f32.mxu1 %v618_v0  ;;  %s582_s16 = scalar_lea.vmem %s438_s15, 128  ;;  %p587_p5 = scmp.lt.s32.totalorder %s438_s15, %s438_s15 }
  0x56   :  { %467 = vmatpush1.bf16.msra.mxu0 %v466_v32  ;;  %473 = vmatprep.subr.bf16.mxu1 %v472_v34  ;;  %p583_p4 = scmp.ne.s32.totalorder %s438_s15, %s582_s16  ;;  %p588_p6 = scmp.lt.s32.totalorder %s582_s16, %s582_s16 }
  0x58   :  { %p589_p7 = por %p588_p6, %p587_p5 }
  0x59   :  { %450 = vmatmul.mubr.msk.f32.vlgmr.msra.gmra.mrb[0].mxu0 %vm244_vm1, %v72_v38  ;;  %475 = vmatpush1.bf16.msra.mxu1 %v474_v37 }
  0x5a   :  { %p590_p8 = pnand %p589_p7, %p583_p4 }
  0x5c   :  { %451 = vmatmul.mubr.msk.f32.vlgmr.msra.gmra.mrb[0].mxu1 %vm244_vm1, %v72_v38 }
 0x12c   :  { %v314_v44 = vpop.f32.mrb[0].mxu0 }
 0x12d   :  { %v412_v45 = vadd.f32 %v395_v43, %v314_v44  ;;  %v316_v46 = vpop.f32.mrb[1].mxu0 }
 0x12e   :  { %v413_v52 = vadd.f32 %v399_v51, %v316_v46 }
 0x12f   :  { %v416_v48 = vmul.f32 0.5, %v412_v45  ;;  %v385_v49 = vpop.f32.mrb[0].mxu1 }
 0x130   :  { %v387_v50 = vpop.f32.mrb[1].mxu1  ;;  %v417_v55 = vmul.f32 0.5, %v413_v52  ;;  %v414_v62 = vadd.f32 %v403_v59, %v385_v49 }
 0x131   :  { %488 = vtanh.f32 %v416_v48  ;;  %v415_v60 = vadd.f32 %v407_v56, %v387_v50 }
 0x132   :  { %490 = vtanh.f32 %v417_v55 }
 0x13b   :  { %v489_v57 = vpop.eup %488 }
 0x13c   :  { %v420_v58 = vmul.f32 0.5, %v489_v57  ;;  %v491_v1 = vpop.eup %490 }
 0x13d   :  { %v421_v2 = vmul.f32 0.5, %v491_v1 }
 0x13e   :  { %v422_v61 = vadd.f32 0.5, %v420_v58 }
 0x13f   :  { %v423_v4 = vadd.f32 0.5, %v421_v2 }
 0x140   :  { %v424_v63 = vmul.f32 %v422_v61, %v415_v60 }
 0x142   :  { %v425_v0 = vadd.f32 %v424_v63, %v414_v62 }
 0x144   :  { %492 = vtanh.f32 %v425_v0 }
 0x14e   :  { %v493_v3 = vpop.eup %492 }
 0x14f   :  { %v427_v5 = vsub.f32 %v72_v38, %v493_v3 }
 0x151   :  { %v428_v6 = vmul.f32 %v427_v5, %v423_v4 }
 0x153   :  { %v429_v7 = vadd.f32 %v493_v3, %v428_v6 }
 0x155   :  { %430 = vst.msk [vmem:[#allocation10] sm:$0xff] %vm244_vm1, %v429_v7 }
 0x156   :  { %593 = shalt.err (!%p590_p8)
}
 0x157   :  { %s594_s19 = scalar_lea.hbm %s723_s5, 128 }
 0x158   :  { %p595_p9 = scmp.ne.s32.totalorder %s723_s5, %s594_s19  ;;  %p598_p10 = scmp.lt.u32.totalorder %s594_s19, %s723_s5 }
 0x15a   :  { %p600_p11 = pnand %p598_p10, %p595_p9 }
 0x15c   :  { %603 = shalt.err (!%p600_p11)
}
 0x15d   :  { %440 = dma.vmem_to_hbm [thread:$0]  %s438_s15, 128, %s723_s5, [#allocation4]  }
 0x15e   :  { %610 = dma.done.wait [#allocation4], 128  }
 0x15f   :  { %611 = vsyncadd [#allocation4], 4294967168 }
 0x160   :  { %444 = vsyncpa [#allocation3], 1 }
 0x161   :  { %445 = vsyncpa [#allocation6], 1 }
 0x162   :  { %446 = vsyncpa [#allocation9], 1 }
 0x163   :  { %447 = vsyncpa [#allocation4], 1 }

</bundles_post_ra>
